<compile_context>
chip_gen: v7x
topology: tpu7x:2x2x1
jax: 0.10.0
libtpu: 0.0.40
codegen_flags: <defaults>
</compile_context>

<pallas_src>
import jax
import jax.numpy as jnp
from jax.experimental import pallas as pl
from jax.experimental.pallas import tpu as pltpu


def _bbox_head_kernel(w_ref, b_ref, x_ref, o_ref):
    # w_ref: (K, C)      1x1-conv weight (K = num_anchors*4), compute dtype
    # b_ref: (K, 1)      bias, f32
    # x_ref: (1, C, t)   activation tile in NC(HW) layout (no transpose needed)
    # o_ref: (1, K, t)   output tile, lane-dense along the spatial dim
    acc = jax.lax.dot_general(
        w_ref[...], x_ref[0],
        dimension_numbers=(((1,), (0,)), ((), ())),
        preferred_element_type=jnp.float32)            # (K, t), f32 accumulate
    o_ref[0] = (acc + b_ref[...]).astype(o_ref.dtype)


def _round_up(x, m):
    return -(-x // m) * m


def _vmem_capacity_bytes():
    """Physical VMEM per core; fall back to the smallest (v7x: 64 MiB/TC)."""
    try:
        cap = getattr(pltpu.get_tpu_info(), "vmem_capacity_bytes", None)
        if cap:
            return int(cap)
    except Exception:
        pass
    return 64 * 1024 * 1024


def _choose_spatial_tile(hw, c, k, in_itemsize, out_itemsize, *, n_images,
                         max_tile=8192, vmem_budget_bytes=None):
    """Pick the spatial tile t (multiple of 128, or == hw when hw <= 128)."""
    if hw <= 128:
        return hw  # block == full array dim is always a legal block shape
    if vmem_budget_bytes is None:
        vmem_budget_bytes = int(0.45 * _vmem_capacity_bytes())

    def vmem_bytes(t):
        # double-buffered activation tile + double-buffered output tile
        # + (double-buffered) resident weight/bias
        return (2 * c * t * in_itemsize
                + 2 * k * t * out_itemsize
                + 2 * (c * k * in_itemsize + k * 4))

    cap = max(128, min(max_tile, (hw // 128) * 128))
    if n_images == 1:
        # v7x megacore: keep >= 2 steps on the spatial grid axis so both
        # TensorCores get work (costs one extra ~0.35us step on 1-TC chips).
        cap = min(cap, max(128, _round_up(-(-hw // 2), 128)))
    while cap > 128 and vmem_bytes(cap) > vmem_budget_bytes:
        cap -= 128
    # Same number of grid steps as `cap`, but spread HW evenly across them so
    # the boundary block is minimally (often zero-) padded.
    steps = -(-hw // cap)
    return min(cap, _round_up(-(-hw // steps), 128))


def bbox_head_forward(x_nchw, weight, bias, *, num_anchors,
                      spatial_tile=None, compute_dtype=jnp.bfloat16):
    """BboxHead forward.

    x_nchw: (N, C, H, W); weight: (K, C) = conv1x1 weight with the 1x1 kernel
    dims squeezed; bias: (K,). Returns (N, H*W*num_anchors, 4), matching
    `conv1x1(x).permute(0,2,3,1).contiguous().view(N, -1, 4)`.

    compute_dtype=jnp.bfloat16 (default) halves activation HBM traffic on this
    bandwidth-bound op with f32 MXU accumulation (abs error ~1e-2 level);
    pass compute_dtype=jnp.float32 for exact parity with the PyTorch module.
    """
    N, C, H, W = x_nchw.shape
    K = num_anchors * 4
    assert weight.shape == (K, C) and bias.shape == (K,)
    HW = H * W

    in_dtype = jnp.dtype(compute_dtype if compute_dtype is not None
                         else x_nchw.dtype)
    out_dtype = x_nchw.dtype

    # (N, C, H, W) -> (N, C, H*W): pure reshape, no transpose / extra HBM pass.
    x = x_nchw.reshape(N, C, HW)
    if x.dtype != in_dtype:
        # Fuses with the producer when called inside the same jit.
        x = x.astype(in_dtype)
    w = weight.astype(in_dtype)                 # (K, C)
    b = bias.reshape(K, 1).astype(jnp.float32)  # (K, 1), added in f32

    in_itemsize = in_dtype.itemsize
    out_itemsize = jnp.dtype(out_dtype).itemsize
    t = spatial_tile if spatial_tile is not None else _choose_spatial_tile(
        HW, C, K, in_itemsize, out_itemsize, n_images=N)
    grid = (N, pl.cdiv(HW, t))

    vmem_cap = _vmem_capacity_bytes()
    vmem_limit = min(int(0.6 * vmem_cap), vmem_cap)

    cost = pl.CostEstimate(
        flops=2 * N * HW * C * K,
        transcendentals=0,
        bytes_accessed=(N * HW * C + C * K) * in_itemsize
        + N * HW * K * out_itemsize + K * 4)

    out_khw = pl.pallas_call(
        _bbox_head_kernel,
        out_shape=jax.ShapeDtypeStruct((N, K, HW), out_dtype),
        grid_spec=pltpu.PrefetchScalarGridSpec(
            num_scalar_prefetch=0,
            grid=grid,
            in_specs=[
                pl.BlockSpec((K, C), lambda n, j: (0, 0)),        # weight (resident)
                pl.BlockSpec((K, 1), lambda n, j: (0, 0)),        # bias   (resident)
                pl.BlockSpec((1, C, t), lambda n, j: (n, 0, j)),  # activation tile
            ],
            out_specs=pl.BlockSpec((1, K, t), lambda n, j: (n, 0, j)),
        ),
        compiler_params=pltpu.CompilerParams(
            dimension_semantics=("parallel", "parallel"),
            vmem_limit_bytes=vmem_limit),
        cost_estimate=cost,
    )(w, b, x)

    # (N, K, HW) -> (N, HW, K) -> (N, HW*A, 4): cheap transpose of the small
    # output tensor (typically fuses with the downstream consumer in XLA);
    # identical to PyTorch's permute(0,2,3,1).contiguous().view(N, -1, 4).
    return jnp.transpose(out_khw, (0, 2, 1)).reshape(N, HW * num_anchors, 4)


if __name__ == "__main__":
    # Small synthetic config (module default is inchannels=512, num_anchors=3;
    # keep num_anchors=3 and shrink the channel dim).
    N, C_in, H, W = 2, 32, 16, 16
    num_anchors = 3
    K = num_anchors * 4

    key = jax.random.PRNGKey(0)
    kx, kw, kb = jax.random.split(key, 3)
    x = jax.random.normal(kx, (N, C_in, H, W), dtype=jnp.float32)
    weight = jax.random.normal(kw, (K, C_in), dtype=jnp.float32) * 0.05
    bias = jax.random.normal(kb, (K,), dtype=jnp.float32) * 0.05

    # Reference (plain JAX) for the 1x1-conv + permute + view semantics.
    ref = (jnp.transpose(x, (0, 2, 3, 1)).reshape(-1, C_in) @ weight.T
           + bias).reshape(N, H * W * num_anchors, 4)

    # Default path: bf16 reads, f32 MXU accumulation (bandwidth-optimal).
    out_bf16 = jax.block_until_ready(
        bbox_head_forward(x, weight, bias, num_anchors=num_anchors))
    assert out_bf16.shape == (N, H * W * num_anchors, 4)
    assert out_bf16.dtype == jnp.float32
    assert jnp.allclose(out_bf16, ref, atol=3e-2, rtol=3e-2)

    # Exact-parity path with the PyTorch module (f32 end to end).
    out_f32 = jax.block_until_ready(
        bbox_head_forward(x, weight, bias, num_anchors=num_anchors,
                          compute_dtype=jnp.float32))
    assert jnp.allclose(out_f32, ref, atol=1e-3, rtol=1e-3)

    print("KERNEL_OK")
</pallas_src>

<mosaic_0001>
module attributes {stable_mosaic.version = 11 : i64} {
  func.func @_bbox_head_kernel(%arg0: i32, %arg1: i32, %arg2: memref<12x32xbf16, #tpu.memory_space<vmem>>, %arg3: memref<12x1xf32, #tpu.memory_space<vmem>>, %arg4: memref<1x32x256xbf16, #tpu.memory_space<vmem>>, %arg5: memref<1x12x256xf32, #tpu.memory_space<vmem>>) attributes {dimension_semantics = [#tpu.dimension_semantics<parallel>, #tpu.dimension_semantics<parallel>], iteration_bounds = array<i64: 2, 1>, scalar_prefetch = 0 : i64, scratch_operands = 0 : i64, tpu.core_type = #tpu.core_type<tc>, window_params = [{pipeline_mode = #tpu.pipeline_mode<synchronous>, transform_indices = @transform_0, window_bounds = array<i64: 12, 32>}, {pipeline_mode = #tpu.pipeline_mode<synchronous>, transform_indices = @transform_1, window_bounds = array<i64: 12, 1>}, {transform_indices = @transform_2, window_bounds = array<i64: 1, 32, 256>}, {transform_indices = @transform_3, window_bounds = array<i64: 1, 12, 256>}]} {
    %c0 = arith.constant 0 : index
    %c0_0 = arith.constant 0 : index
    %0 = vector.load %arg2[%c0, %c0_0] : memref<12x32xbf16, #tpu.memory_space<vmem>>, vector<12x32xbf16>
    %c0_1 = arith.constant 0 : index
    %c0_2 = arith.constant 0 : index
    %c0_3 = arith.constant 0 : index
    %1 = vector.load %arg4[%c0_1, %c0_2, %c0_3] : memref<1x32x256xbf16, #tpu.memory_space<vmem>>, vector<1x32x256xbf16>
    %2 = vector.shape_cast %1 : vector<1x32x256xbf16> to vector<32x256xbf16>
    %cst = arith.constant dense<0.000000e+00> : vector<12x256xf32>
    %3 = tpu.matmul %0, %2, %cst {dimension_numbers = #tpu.dot_dimension_numbers<[1], [0], [0], [1], [0, 0, 1, 1], [], []>} : vector<12x32xbf16>, vector<32x256xbf16>, vector<12x256xf32> -> vector<12x256xf32>
    %c0_4 = arith.constant 0 : index
    %c0_5 = arith.constant 0 : index
    %4 = vector.load %arg3[%c0_4, %c0_5] : memref<12x1xf32, #tpu.memory_space<vmem>>, vector<12x1xf32>
    %5 = vector.broadcast %4 : vector<12x1xf32> to vector<12x256xf32>
    %6 = arith.addf %3, %5 : vector<12x256xf32>
    %c0_6 = arith.constant 0 : index
    %c0_7 = arith.constant 0 : index
    %c0_8 = arith.constant 0 : index
    %7 = vector.load %arg5[%c0_6, %c0_7, %c0_8] : memref<1x12x256xf32, #tpu.memory_space<vmem>>, vector<1x12x256xf32>
    %8 = vector.shape_cast %7 : vector<1x12x256xf32> to vector<12x256xf32>
    %9 = vector.shape_cast %6 : vector<12x256xf32> to vector<1x12x256xf32>
    tpu.vector_store %arg5[%c0_6, %c0_7, %c0_8], %9 {strides = array<i32>} : memref<1x12x256xf32, #tpu.memory_space<vmem>>, vector<1x12x256xf32>,
    return
  }
  func.func @transform_0(%arg0: i32, %arg1: i32) -> (i32, i32) {
    %c0_i32 = arith.constant 0 : i32
    %c0_i32_0 = arith.constant 0 : i32
    %c0_i32_1 = arith.constant 0 : i32
    return %c0_i32, %c0_i32_0 : i32, i32
  }
  func.func @transform_1(%arg0: i32, %arg1: i32) -> (i32, i32) {
    %c0_i32 = arith.constant 0 : i32
    %c0_i32_0 = arith.constant 0 : i32
    %c0_i32_1 = arith.constant 0 : i32
    return %c0_i32, %c0_i32_0 : i32, i32
  }
  func.func @transform_2(%arg0: i32, %arg1: i32) -> (i32, i32, i32) {
    %c0_i32 = arith.constant 0 : i32
    %c0_i32_0 = arith.constant 0 : i32
    return %arg0, %c0_i32, %arg1 : i32, i32, i32
  }
  func.func @transform_3(%arg0: i32, %arg1: i32) -> (i32, i32, i32) {
    %c0_i32 = arith.constant 0 : i32
    %c0_i32_0 = arith.constant 0 : i32
    return %arg0, %c0_i32, %arg1 : i32, i32, i32
  }
}

</mosaic_0001>

<bundles_post_ra>
// kernel: tpu_custom_call.1
= control target key start
LH: loop header
LB: loop body
LE: loop exit
PB: predicated region body
PF: predicated region fallthrough
CT: control target
= control target key end

     0   :  { %8 = vsyncpa [#allocation3], 0  ;;  %s735_s0 = inlined_call_operand.vmem [shape: bf16[12,32], index: 0, kind: input, shape index: {}]   ;;  %s736_s1 = inlined_call_operand.vmem [shape: f32[12,1], index: 1, kind: input, shape index: {}]   ;;  %s737_s2 = inlined_call_operand.hbm [shape: bf16[2,32,256], index: 2, kind: input, shape index: {}]   ;;  %s738_s3 = inlined_call_operand.vmem [shape: f32[2,12,256], index: 3, kind: output, shape index: {}]  }
   0x1   :  { %10 = vsyncpa [#allocation3 + $0x1], 0  ;;  %s602_s12 = smov 0   ;;  %s604_s13 = smov 0  }
   0x2   :  { %s606_s14 = smov 0   ;;  %s608_s15 = smov 0  }
   0x3   :  { %s610_s16 = smov 0   ;;  %s612_s17 = smov 0  }
   0x4 LB: > { %s409_s18 = sadd.s32 4294967295, %s576_s17   ;;  %s28_s19 = sadd.s32 1, %s572_s16  ;;  %s576_s17 = sphi %s612_s17, %s16_s17   ;;  %s572_s16 = sphi %s610_s16, %s746_s16   ;;  %s568_s15 = sphi %s608_s15, %s745_s15   ;;  %s564_s14 = sphi %s606_s14, %s744_s14   ;;  %s560_s13 = sphi %s604_s13, %s743_s13   ;;  %s556_s12 = sphi %s602_s12, %s742_s12  }
   0x5   : > { %p30_p0 = scmp.ge.s32.totalorder %s28_s19, 2  ;;  %s79_s20 = sadd.s32 1, %s564_s14 }
   0x6   : > { %p86_p1 = scmp.ne.s32.totalorder %s564_s14, %s560_s13  ;;  %p87_p2 = scmp.eq.s32.totalorder %s576_s17, 0 }
   0x7   : > { %s748_s19 = smov (%p30_p0, %s28_s19), 0  ;;  %p92_p4 = scmp.ne.s32.totalorder %s560_s13, %s556_s12 }
   0x8   : > { %p638_p3 = por %p87_p2, %p86_p1  ;;  %s74_s22 = ssub.s32 %s572_s16, %s748_s19 }
   0x9   : > { %p93_p5 = scmp.eq.s32.totalorder %s409_s18, 0  ;;  %p77_p6 = scmp.eq.s32.totalorder %s74_s22, 0 }
   0xa   : > { %p436_p8 = scmp.lt.s32.totalorder %s576_s17, 2  ;;  %s150_s25 = sand.u32 1, %s564_s14  }
   0xb   : > { %p645_p7 = por %p93_p5, %p92_p4  ;;  %s428_s26 = sshll.u32 %s572_s16, 9 }
   0xc   : > { %s651_s24 = scalar_select %p77_p6, %s564_s14, %s79_s20  }
   0xd   : > { %s413_s27 = sshll.u32 %s150_s25, 5  ;;  %s658_s30 = scalar_lea.hbm %s737_s2, %s428_s26 }
   0xe   : > { %s154_s4 = scalar_lea.vmem [#allocation2], %s413_s27  ;;  %p662_p9 = pnand %p436_p8, %p638_p3 }
   0xf   : > { %s163_s5 = sshll.u32 %s154_s4, 4  ;;  %s668_s7 = scalar_lea.sflag [#allocation3], %s150_s25  ;;  %s666_s5 = int_to_ptr.vmem [resolvable:$true] %s163_s5 }
  0x10   : > { %s496_s8 = scalar_lea.hbm %s658_s30, 512  ;;  %p498_p11 = pneg %p662_p9 }
  0x11   : > { %p497_p10 = scmp.ne.s32.totalorder %s658_s30, %s496_s8  ;;  %s501_s11 = scalar_lea.hbm %s737_s2, 1024 }
  0x12   : > { %p502_p0 = scmp.lt.u32.totalorder %s658_s30, %s737_s2  ;;  %p503_p1 = scmp.lt.u32.totalorder %s501_s11, %s496_s8 }
  0x13   : > { %p499_p12 = pnand %p498_p11, %p497_p10  ;;  %p505_p3 = scmp.lt.u32.totalorder %s496_s8, %s658_s30 }
  0x14   : > { %p504_p2 = por %p503_p1, %p502_p0 }
  0x15   : > { %p500_p13 = pneg %p499_p12 }
  0x16   : > { %p506_p4 = por %p505_p3, %p504_p2 }
  0x18   : > { %p507_p5 = pnand %p506_p4, %p500_p13 }
  0x1a   : > { %510 = shalt.err (!%p507_p5)
}
  0x1b   : > { %s511_s20 = scalar_lea.vmem %s666_s5, 512  ;;  %s578_s21 = smov [#allocation2]  }
  0x1c   : > { %p512_p6 = scmp.ne.s32.totalorder %s666_s5, %s511_s20  ;;  %s516_s22 = sshll.u32 %s578_s21, 4  ;;  %s517_s22 = int_to_ptr.vmem [resolvable:$false] %s516_s22 }
  0x1d   : > { %s518_s25 = scalar_lea.vmem %s517_s22, 1024  ;;  %p519_p12 = scmp.lt.s32.totalorder %s666_s5, %s517_s22 }
  0x1e   : > { %p514_p8 = pnand %p512_p6, %p498_p11  ;;  %p520_p0 = scmp.lt.s32.totalorder %s518_s25, %s511_s20 }
  0x20   : > { %p515_p10 = pneg %p514_p8  ;;  %p521_p1 = por %p520_p0, %p519_p12 }
  0x22   : > { %p522_p2 = pnand %p521_p1, %p515_p10 }
  0x24   : > { %525 = shalt.err (!%p522_p2)
}
  0x25   : > { %s579_s26 = smov 128   ;;  %s580_s27 = smov 8  }
  0x26   : > { %435 = dma.hbm_to_vmem [thread:$0]  (!%p662_p9), %s658_s30, 512, %s666_s5, %s668_s7, %s579_s26, %s579_s26, %s580_s27  }
  0x27   : > { %p416_p11 = scmp.ge.s32.totalorder %s576_s17, 1  ;;  %p171_p13 = scmp.lt.s32.totalorder %s576_s17, 3 }
  0x29   : > { %p172_p3 = pnand %p416_p11, %p171_p13 }
  0x2a   : > { %s177_s28 = sand.u32 (!%p172_p3), 1, %s560_s13  }
  0x2b   : > { %175 = sbr.rel (%p172_p3) target bundleno = 279 (0x117), region = 32  ;;  %s417_s29 = sshll.u32 (!%p172_p3), %s177_s28, 5 }
  0x2c   : > { %s178_s4 = scalar_lea.sflag (!%p172_p3), [#allocation3], %s177_s28  ;;  %s181_s8 = scalar_lea.vmem (!%p172_p3), [#allocation2], %s417_s29 }
  0x32   : > { %551 = dma.done.wait (%p645_p7), %s178_s4, 512  }
  0x33   : > { %553 = vsyncadd (%p645_p7), %s178_s4, 4294966784  ;;  %v581_v0 = vmov 0   ;;  %v489_v1 = vld [vmem:[%s181_s8 + $0x4] ss:$8 sps:$4 sm:$0xff]   ;;  %v491_v2 = vld [vmem:[%s181_s8] ss:$8 sps:$4 sm:$0xff]  }
  0x34   : > { %299 = vmatprep.mubr.bf16.mxu0 %v581_v0  ;;  %488 = vset.pattern.permute.xlu0 %v581_v0  ;;  %v492_v3 = vld [vmem:[%s181_s8 + $0x14] ss:$8 sps:$4 sm:$0xff]   ;;  %v494_v4 = vld [vmem:[%s181_s8 + $0x10] ss:$8 sps:$4 sm:$0xff]   ;;  %v226_v5 = vld [vmem:[%s736_s1] sm:$0xff]  ;;  %vm263_vm0 = vcmask 261120  }
  0x35   : > { %267 = vmatprep.subr.bf16.mxu0 %v489_v1  ;;  %230 = vperm.xlu0 %488, %v226_v5   ;;  %v227_v6 = vld [vmem:[%s736_s1 + $0x8] sm:$0xf]  ;;  %v495_v7 = vld [vmem:[%s735_s0] sm:$0x3f]   ;;  %p210_p7 = scmp.lt.s32.totalorder %s568_s15, 1 }
  0x36   : > { %268 = vmatpush1.bf16.msra.mxu0 %v491_v2 }
  0x37   : > { %269 = vmatprep.subr.bf16.mxu0 %v492_v3  ;;  %s750_s15 = smov (!%p210_p7, %s568_s15), 1 }
  0x38   : > { %s429_s10 = sshll.u32 %s750_s15, 5 }
  0x39   : > { %235 = vperm.xlu0 %488, %v227_v6   ;;  %s217_s18 = scalar_lea.vmem %s738_s3, %s429_s10 }
  0x3a   : > { %270 = vmatpush1.bf16.msra.mxu0 %v494_v4 }
  0x3d   : > { %425 = vmatmul.mubr.msk.bf16.vlgmr.msra.gmra.mrb[0].mxu0 %vm263_vm0, %v495_v7 }
  0xb4   : > { %v231_v8 = vpop.permute.xlu0 %230 }
  0xb8   : > { %v236_v12 = vpop.permute.xlu0 %235 }
 0x110   : > { %v301_v9 = vpop.f32.mrb[0].mxu0 }
 0x111   : > { %v302_v10 = vadd.f32 %v301_v9, %v231_v8  ;;  %v303_v11 = vpop.f32.mrb[1].mxu0 }
 0x112   : > { %v304_v13 = vadd.f32 %v303_v11, %v231_v8  ;;  %v305_v14 = vpop.f32.mrb[2].mxu0 }
 0x113   : > { %310 = vst [vmem:[%s217_s18] sm:$0xff] %v302_v10  ;;  %v306_v15 = vadd.f32 %v305_v14, %v236_v12  ;;  %v307_v16 = vpop.f32.mrb[3].mxu0 }
 0x114   : > { %311 = vst [vmem:[%s217_s18 + $0x8] sm:$0xff] %v304_v13  ;;  %v308_v17 = vadd.f32 %v307_v16, %v236_v12 }
 0x115   : > { %312 = vst [vmem:[%s217_s18 + $0x10] sm:$0xf] %v306_v15 }
 0x116   : > { %313 = vst [vmem:[%s217_s18 + $0x18] sm:$0xf] %v308_v17 }
 0x117 PF: > { %s16_s17 = sadd.s32 1, %s576_s17   ;;  %s742_s12 = smov %s560_s13 }
 0x118   : > { %p13_p9 = scmp.ge.s32.totalorder %s16_s17, 4   ;;  %s743_s13 = smov %s564_s14 }
 0x119   : > { %s744_s14 = smov %s651_s24  ;;  %s745_s15 = smov %s572_s16 }
 0x11a   : > { %s746_s16 = smov %s748_s19  ;;  %15 = sbr.rel (!%p13_p9) target bundleno = 4 (0x4), region = 72 }
 0x121   :  { %344 = vsyncpa [#allocation3], 1 }
 0x122   :  { %346 = vsyncpa [#allocation3 + $0x1], 1 }

</bundles_post_ra>
